<compile_context>
chip_gen: v6e
topology: v6e:2x2x1
jax: 0.10.0
libtpu: 0.0.40
codegen_flags: <defaults>
</compile_context>

<pallas_src>
import functools

import jax
import jax.numpy as jnp
from jax import lax
from jax.experimental import pallas as pl
from jax.experimental.pallas import tpu as pltpu


def _round_up(n, m):
    return ((n + m - 1) // m) * m


# ---------------------------------------------------------------------------
# Parameter packing: one contiguous (rows, width) f32 buffer, 128-lane aligned.
# Biases + the 100x output scale are folded in via an augmented constant-1 row
# (affine trick), so the kernel never adds a bias explicitly.  Zero padding is
# load-bearing: keep this buffer zero-initialized.
# ---------------------------------------------------------------------------
def pack_params(params):
    w1, b1 = params["w1"], params["b1"]          # (in, h1), (1, h1)
    w2, b2 = params["w2"], params["b2"]          # (h1, h2), (1, h2)
    w3, b3 = params["w3"], params["b3"]          # (h2, 1),  (1, 1)

    in_size, h1 = w1.shape
    h2 = w2.shape[1]
    assert w3.shape == (h2, 1), "kernel is specialized for output_size == 1"

    width = _round_up(max(h1, h2) + 1, 128)      # +1: reserve last lane for the const
    const = width - 1                            # lane/row index carrying the constant 1
    in_p = _round_up(in_size + 1, 8)             # input features + constant-1 row

    r_w1 = 0                                     # (in_p,  width) augmented layer-1 slab
    r_w2 = in_p                                  # (width, width) augmented layer-2 slab
    r_w3 = in_p + width                          # (8,     width) augmented layer-3 row
    rows = r_w3 + 8

    buf = jnp.zeros((rows, width), jnp.float32)

    # Layer 1: rows 0..in_size-1 = W1; row `in_size` = [b1 ... , 1.0 in lane `const`].
    buf = buf.at[r_w1:r_w1 + in_size, 0:h1].set(w1.astype(jnp.float32))
    buf = buf.at[r_w1 + in_size, 0:h1].set(b1.reshape(h1).astype(jnp.float32))
    buf = buf.at[r_w1 + in_size, const].set(1.0)

    # Layer 2: rows 0..h1-1 = W2; row `const` = [b2 ... , 1.0 in lane `const`].
    buf = buf.at[r_w2:r_w2 + h1, 0:h2].set(w2.astype(jnp.float32))
    buf = buf.at[r_w2 + const, 0:h2].set(b2.reshape(h2).astype(jnp.float32))
    buf = buf.at[r_w2 + const, const].set(1.0)

    # Layer 3 (single row): 100*w3 in lanes 0..h2-1, 100*b3 in lane `const`.
    buf = buf.at[r_w3, 0:h2].set(100.0 * w3.reshape(h2).astype(jnp.float32))
    buf = buf.at[r_w3, const].set(100.0 * jnp.asarray(b3, jnp.float32).reshape(()))

    meta = dict(in_size=in_size, h1=h1, h2=h2, in_p=in_p, width=width,
                r_w1=r_w1, r_w2=r_w2, r_w3=r_w3, const=const)
    return buf, meta


# ---------------------------------------------------------------------------
# Fused MLP kernel (batch on the lane axis; closure over static packing offsets).
# ---------------------------------------------------------------------------
def _make_kernel(in_p, width, r_w1, r_w2, r_w3):
    dn = (((0,), (0,)), ((), ()))   # contract lhs dim 0 with rhs dim 0  (lhs^T @ rhs)

    def kernel(xt_ref, p_ref, o_ref):
        xt = xt_ref[...]                           # (in_p, tile_m), batch on lanes
        w1a = p_ref[r_w1:r_w1 + in_p, :]           # (in_p,  width)  full-width, rows only
        w2a = p_ref[r_w2:r_w2 + width, :]          # (width, width)
        w3a = p_ref[r_w3:r_w3 + 1, :]              # (1,     width)

        # Layer 1: relu(W1^T x + b1); bias rides the constant-1 row of xt.   (MXU)
        h = lax.dot_general(w1a, xt, dn, preferred_element_type=jnp.float32)
        h = jnp.maximum(h, 0.0)                    # (width, tile_m); row `const` == 1

        # Dropout: identity at inference.
        # TODO(synk): training-mode dropout (pltpu.prng_seed / prng_random_bits) not emitted.

        # Layer 2: relu(W2^T h + b2); bias rides row `const` of h.           (MXU)
        h = lax.dot_general(w2a, h, dn, preferred_element_type=jnp.float32)
        h = jnp.maximum(h, 0.0)

        # Layer 3: 100*(w3^T h + b3) as a lane-dense (1, tile_m) row.        (MXU)
        out = jnp.dot(w3a, h, preferred_element_type=jnp.float32)
        o_ref[...] = out.astype(o_ref.dtype)

    return kernel


# ---------------------------------------------------------------------------
# Wrapper.
# ---------------------------------------------------------------------------
@functools.partial(
    jax.jit,
    static_argnames=("in_size", "in_p", "width", "r_w1", "r_w2", "r_w3", "tile_m"))
def _forward_impl(x, packed, *, in_size, in_p, width, r_w1, r_w2, r_w3, tile_m):
    batch = x.shape[0]
    b_pad = _round_up(batch, tile_m)

    # Augmented + transposed input: (in_p, b_pad).  Row `in_size` is the constant-1
    # row that carries the biases; remaining rows / lanes are zero padding.
    xt = jnp.zeros((in_p, b_pad), jnp.float32)
    xt = xt.at[:in_size, :batch].set(x.astype(jnp.float32).T)
    xt = xt.at[in_size, :].set(1.0)

    kernel = _make_kernel(in_p, width, r_w1, r_w2, r_w3)
    grid = (b_pad // tile_m,)

    flops = 2 * b_pad * (in_p * width + width * width + width)
    bytes_accessed = (in_p * b_pad + packed.size + b_pad) * 4

    out = pl.pallas_call(
        kernel,
        out_shape=jax.ShapeDtypeStruct((1, b_pad), jnp.float32),
        grid=grid,
        in_specs=[
            pl.BlockSpec((in_p, tile_m), lambda i: (0, i)),
            # Full packed-parameter slab, constant index map -> VMEM-resident across
            # grid steps (copied in once).
            pl.BlockSpec(packed.shape, lambda i: (0, 0)),
        ],
        out_specs=pl.BlockSpec((1, tile_m), lambda i: (0, i)),
        compiler_params=pltpu.CompilerParams(
            dimension_semantics=("parallel",)),    # v7x: shard batch blocks across TCs
        cost_estimate=pl.CostEstimate(
            flops=flops, transcendentals=0, bytes_accessed=bytes_accessed),
    )(xt, packed)

    return out[0, :batch].reshape(batch, 1)


def _choose_tile_m(batch, tile_m_max):
    # Lane-aligned; once the batch is big enough, at least 2 grid steps so the
    # "parallel" axis gives both v7x TensorCores work (harmless on v5e/v6e).
    half = -(-batch // 2)
    return max(128, min(tile_m_max, _round_up(half, 128)))


def survival_rate_forward(x, packed, meta, *, tile_m_max=2048):
    """x: (B, input_size) f32.  packed/meta: from pack_params().  Returns (B, 1)."""
    tile_m = _choose_tile_m(x.shape[0], tile_m_max)
    return _forward_impl(
        x, packed,
        in_size=meta["in_size"], in_p=meta["in_p"], width=meta["width"],
        r_w1=meta["r_w1"], r_w2=meta["r_w2"], r_w3=meta["r_w3"], tile_m=tile_m)


# ---------------------------------------------------------------------------
# Init (mimics nn.Linear U(-1/sqrt(fan_in), 1/sqrt(fan_in))) and reference.
# ---------------------------------------------------------------------------
def init_params(key, input_size, hidden_size1, hidden_size2, output_size=1):
    ks = jax.random.split(key, 6)

    def linear(kw, kb, fan_in, fan_out):
        bound = 1.0 / jnp.sqrt(float(fan_in))
        w = jax.random.uniform(kw, (fan_in, fan_out), jnp.float32, -bound, bound)
        b = jax.random.uniform(kb, (1, fan_out), jnp.float32, -bound, bound)
        return w, b

    w1, b1 = linear(ks[0], ks[1], input_size, hidden_size1)
    w2, b2 = linear(ks[2], ks[3], hidden_size1, hidden_size2)
    w3, b3 = linear(ks[4], ks[5], hidden_size2, output_size)
    return {"w1": w1, "b1": b1, "w2": w2, "b2": b2, "w3": w3, "b3": b3}


def reference_forward(x, p):
    h1 = jnp.maximum(x @ p["w1"] + p["b1"], 0.0)
    h2 = jnp.maximum(h1 @ p["w2"] + p["b2"], 0.0)
    return 100.0 * (h2 @ p["w3"] + p["b3"])


if __name__ == "__main__":
    key = jax.random.PRNGKey(0)
    k_x, k_p, k_xb = jax.random.split(key, 3)

    batch = 8
    input_size = 16
    hidden_size1 = 32
    hidden_size2 = 32
    output_size = 1
    dropout = 0.2  # inference mode: identity

    x = jax.random.normal(k_x, (batch, input_size), dtype=jnp.float32)
    params = init_params(k_p, input_size, hidden_size1, hidden_size2, output_size)
    packed, meta = pack_params(params)

    # Small batch: single 128-lane block, one grid step.
    out = jax.block_until_ready(survival_rate_forward(x, packed, meta))
    ref = reference_forward(x, params)
    assert out.shape == (batch, output_size), out.shape
    assert jnp.allclose(out, ref, rtol=1e-4, atol=1e-3), (out, ref)

    # Larger, non-tile-divisible batch: exercises batch padding + multi-step
    # "parallel" grid (2 blocks of 512).
    xb = jax.random.normal(k_xb, (1000, input_size), dtype=jnp.float32)
    out_b = jax.block_until_ready(survival_rate_forward(xb, packed, meta))
    ref_b = reference_forward(xb, params)
    assert out_b.shape == (1000, output_size), out_b.shape
    assert jnp.allclose(out_b, ref_b, rtol=1e-4, atol=1e-3)

    print("KERNEL_OK")
</pallas_src>

<mosaic_0001>
module attributes {stable_mosaic.version = 11 : i64} {
  func.func @kernel(%arg0: i32, %arg1: memref<24x128xf32, #tpu.memory_space<vmem>>, %arg2: memref<160x128xf32, #tpu.memory_space<vmem>>, %arg3: memref<1x128xf32, #tpu.memory_space<vmem>>) attributes {dimension_semantics = [#tpu.dimension_semantics<parallel>], iteration_bounds = array<i64: 1>, scalar_prefetch = 0 : i64, scratch_operands = 0 : i64, tpu.core_type = #tpu.core_type<tc>, window_params = [{transform_indices = @transform_0, window_bounds = array<i64: 24, 128>}, {pipeline_mode = #tpu.pipeline_mode<synchronous>, transform_indices = @transform_1, window_bounds = array<i64: 160, 128>}, {transform_indices = @transform_2, window_bounds = array<i64: 1, 128>}]} {
    %c0 = arith.constant 0 : index
    %c0_0 = arith.constant 0 : index
    %0 = vector.load %arg1[%c0, %c0_0] : memref<24x128xf32, #tpu.memory_space<vmem>>, vector<24x128xf32>
    %c0_1 = arith.constant 0 : index
    %c0_2 = arith.constant 0 : index
    %1 = vector.load %arg2[%c0_1, %c0_2] : memref<160x128xf32, #tpu.memory_space<vmem>>, vector<24x128xf32>
    %c24 = arith.constant 24 : index
    %c0_3 = arith.constant 0 : index
    %2 = vector.load %arg2[%c24, %c0_3] : memref<160x128xf32, #tpu.memory_space<vmem>>, vector<128x128xf32>
    %c152 = arith.constant 152 : index
    %c0_4 = arith.constant 0 : index
    %3 = vector.load %arg2[%c152, %c0_4] : memref<160x128xf32, #tpu.memory_space<vmem>>, vector<1x128xf32>
    %cst = arith.constant dense<0.000000e+00> : vector<128x128xf32>
    %4 = tpu.matmul %1, %0, %cst {dimension_numbers = #tpu.dot_dimension_numbers<[0], [0], [1], [1], [0, 1, 1, 1], [], []>} : vector<24x128xf32>, vector<24x128xf32>, vector<128x128xf32> -> vector<128x128xf32>
    %cst_5 = arith.constant 0.000000e+00 : f32
    %5 = vector.broadcast %cst_5 : f32 to vector<128x128xf32>
    %6 = arith.maximumf %4, %5 : vector<128x128xf32>
    %cst_6 = arith.constant dense<0.000000e+00> : vector<128x128xf32>
    %7 = tpu.matmul %2, %6, %cst_6 {dimension_numbers = #tpu.dot_dimension_numbers<[0], [0], [1], [1], [0, 1, 1, 1], [], []>} : vector<128x128xf32>, vector<128x128xf32>, vector<128x128xf32> -> vector<128x128xf32>
    %cst_7 = arith.constant 0.000000e+00 : f32
    %8 = vector.broadcast %cst_7 : f32 to vector<128x128xf32>
    %9 = arith.maximumf %7, %8 : vector<128x128xf32>
    %cst_8 = arith.constant dense<0.000000e+00> : vector<1x128xf32>
    %10 = tpu.matmul %3, %9, %cst_8 {dimension_numbers = #tpu.dot_dimension_numbers<[1], [0], [0], [1], [0, 0, 1, 1], [], []>} : vector<1x128xf32>, vector<128x128xf32>, vector<1x128xf32> -> vector<1x128xf32>
    %c0_9 = arith.constant 0 : index
    %c0_10 = arith.constant 0 : index
    %11 = vector.load %arg3[%c0_9, %c0_10] : memref<1x128xf32, #tpu.memory_space<vmem>>, vector<1x128xf32>
    tpu.vector_store %arg3[%c0_9, %c0_10], %10 {strides = array<i32>} : memref<1x128xf32, #tpu.memory_space<vmem>>, vector<1x128xf32>,
    return
  }
  func.func @transform_0(%arg0: i32) -> (i32, i32) {
    %c0_i32 = arith.constant 0 : i32
    %c0_i32_0 = arith.constant 0 : i32
    return %c0_i32, %arg0 : i32, i32
  }
  func.func @transform_1(%arg0: i32) -> (i32, i32) {
    %c0_i32 = arith.constant 0 : i32
    %c0_i32_0 = arith.constant 0 : i32
    %c0_i32_1 = arith.constant 0 : i32
    return %c0_i32, %c0_i32_0 : i32, i32
  }
  func.func @transform_2(%arg0: i32) -> (i32, i32) {
    %c0_i32 = arith.constant 0 : i32
    %c0_i32_0 = arith.constant 0 : i32
    return %c0_i32, %arg0 : i32, i32
  }
}

</mosaic_0001>

<bundles_post_ra>
// kernel: _forward_impl.1
= control target key start
LH: loop header
LB: loop body
LE: loop exit
PB: predicated region body
PF: predicated region fallthrough
CT: control target
= control target key end

     0   :  { %7 = vsyncpa [#allocation3], 0  ;;  %s791_s9 = smov [#allocation2]   ;;  %s877_s0 = inlined_call_operand.vmem [shape: f32[24,128], index: 0, kind: input, shape index: {}]   ;;  %s878_s1 = inlined_call_operand.hbm [shape: f32[160,128], index: 1, kind: input, shape index: {}]   ;;  %s879_s2 = inlined_call_operand.vmem [shape: f32[1,128], index: 2, kind: output, shape index: {}]  }
   0x1   :  { %s15_s10 = sshll.u32 %s791_s9, 4  ;;  %s16_s10 = int_to_ptr.vmem [resolvable:$true] %s15_s10 }
   0x2   :  { %s777_s11 = scalar_lea.vmem %s16_s10, 2560  ;;  %p782_p1 = scmp.lt.s32.totalorder %s16_s10, %s16_s10 }
   0x3   :  { %p778_p0 = scmp.ne.s32.totalorder %s16_s10, %s777_s11  ;;  %p783_p2 = scmp.lt.s32.totalorder %s777_s11, %s777_s11 }
   0x5   :  { %p784_p3 = por %p783_p2, %p782_p1 }
   0x7   :  { %p785_p4 = pnand %p784_p3, %p778_p0 }
   0x9   :  { %788 = shalt.err (!%p785_p4)
}
   0xa   :  { %s792_s12 = smov 128   ;;  %s793_s13 = smov 8  }
   0xb   :  { %21 = dma.hbm_to_vmem [thread:$0]  %s878_s1, 2560, %s16_s10, [#allocation3], %s792_s12, %s792_s12, %s793_s13  }
   0xc   :  { %789 = dma.done.wait [#allocation3], 2560  }
   0xd   :  { %790 = vsyncadd [#allocation3], 4294964736  ;;  %v28_v0 = vld [vmem:[#allocation2] sm:$0xff]  ;;  %v27_v1 = vld [vmem:[%s877_s0 + $0x10] sm:$0xff]  ;;  %vm80_vm0 = vcmask 195584   ;;  %vm795_vm1 = vmmov 0  }
   0xe   :  { %48 = vxpose.xlu0.b32.start [1/3] (short) %v28_v0, 128  ;;  %v26_v2 = vld [vmem:[%s877_s0 + $0x8] sm:$0xff]  ;;  %643 = vmatprep.subr.mxu0 %v27_v1  ;;  %v25_v4 = vld [vmem:[%s877_s0] sm:$0xff]  ;;  %v30_v5 = vld [vmem:[#allocation2 + $0x10] sm:$0xff] }
   0xf   :  { %v29_v3 = vld [vmem:[#allocation2 + $0x8] sm:$0xff]  ;;  %644 = vmatpush3.msra.mxu0 %v27_v1  ;;  %v31_v6 = vld [vmem:[#allocation2 + $0x18] sm:$0xff]  ;;  %v32_v7 = vld [vmem:[#allocation2 + $0x20] sm:$0xff] }
  0x10   :  { %645 = vmatprep.subr.mxu0 %v26_v2  ;;  %290 = vxpose.xlu1.b32.start [1/16] %v31_v6, 128  ;;  %v33_v8 = vld [vmem:[#allocation2 + $0x28] sm:$0xff]  ;;  %v34_v9 = vld [vmem:[#allocation2 + $0x30] sm:$0xff]  ;;  %v35_v10 = vld [vmem:[#allocation2 + $0x38] sm:$0xff] }
  0x11   :  { %646 = vmatpush3.msra.mxu0 %v26_v2  ;;  %v36_v11 = vld [vmem:[#allocation2 + $0x40] sm:$0xff]  ;;  %v37_v12 = vld [vmem:[#allocation2 + $0x48] sm:$0xff]  ;;  %v38_v13 = vld [vmem:[#allocation2 + $0x50] sm:$0xff] }
  0x12   :  { %49 = vxpose.xlu0.b32.cont [2/3] (short) %v29_v3, 128  ;;  %647 = vmatprep.subr.mxu0 %v25_v4  ;;  %v39_v14 = vld [vmem:[#allocation2 + $0x58] sm:$0xff]  ;;  %v40_v15 = vld [vmem:[#allocation2 + $0x60] sm:$0xff]  ;;  %v41_v16 = vld [vmem:[#allocation2 + $0x68] sm:$0xff] }
  0x13   :  { %648 = vmatpush3.msra.mxu0 %v25_v4  ;;  %v42_v17 = vld [vmem:[#allocation2 + $0x70] sm:$0xff]  ;;  %v43_v18 = vld [vmem:[#allocation2 + $0x78] sm:$0xff]  ;;  %v44_v19 = vld [vmem:[#allocation2 + $0x80] sm:$0xff] }
  0x14   :  { %291 = vxpose.xlu1.b32.cont [2/16] %v32_v7, 128  ;;  %v45_v20 = vld [vmem:[#allocation2 + $0x88] sm:$0xff]  ;;  %v46_v21 = vld [vmem:[#allocation2 + $0x90] sm:$0xff] }
  0x16   :  { %50 = vxpose.xlu0.b32.end [3/3] (short) %v30_v5, 128 }
  0x18   :  { %292 = vxpose.xlu1.b32.cont [3/16] %v33_v8, 128 }
  0x1c   :  { %293 = vxpose.xlu1.b32.cont [4/16] %v34_v9, 128 }
  0x20   :  { %294 = vxpose.xlu1.b32.cont [5/16] %v35_v10, 128 }
  0x24   :  { %295 = vxpose.xlu1.b32.cont [6/16] %v36_v11, 128 }
  0x28   :  { %296 = vxpose.xlu1.b32.cont [7/16] %v37_v12, 128 }
  0x2c   :  { %297 = vxpose.xlu1.b32.cont [8/16] %v38_v13, 128 }
  0x30   :  { %298 = vxpose.xlu1.b32.cont [9/16] %v39_v14, 128 }
  0x34   :  { %299 = vxpose.xlu1.b32.cont [10/16] %v40_v15, 128 }
  0x38   :  { %300 = vxpose.xlu1.b32.cont [11/16] %v41_v16, 128 }
  0x3c   :  { %301 = vxpose.xlu1.b32.cont [12/16] %v42_v17, 128 }
  0x40   :  { %302 = vxpose.xlu1.b32.cont [13/16] %v43_v18, 128 }
  0x44   :  { %303 = vxpose.xlu1.b32.cont [14/16] %v44_v19, 128 }
  0x48   :  { %304 = vxpose.xlu1.b32.cont [15/16] %v45_v20, 128 }
  0x4c   :  { %305 = vxpose.xlu1.b32.end [16/16] %v46_v21, 128 }
  0x8a   :  { %v64_v22 = vpop.trf.xlu0 }
  0x8b   :  { %649 = vmatprep.mubr.msk.f32.mxu0 %vm80_vm0, %v64_v22  ;;  %v794_v22 = vmov 0.0  }
  0x8c   :  { %v306_v38 = vpop.trf.xlu1  ;;  %729 = vmatprep.subr.mxu0 %v794_v22 }
  0x8d   :  { %705 = vmatprep.mubr.f32.mxu1 %v306_v38 }
  0x8e   :  { %v65_v23 = vpop.trf.xlu0 }
  0x8f   :  { %650 = vmatmul.mubr.msk.f32.vlgmr.msra.gmra.mxu0 %vm80_vm0, %v65_v23 }
  0x90   :  { %v845_v46 = vpop.trf.xlu1 }
  0x92   :  { %v66_v24 = vpop.trf.xlu0 }
  0x93   :  { %652 = vmatprep.mubr.msk.f32.mxu0 %vm80_vm0, %v66_v24 }
  0x94   :  { %v847_v49 = vpop.trf.xlu1 }
  0x96   :  { %v67_v25 = vpop.trf.xlu0 }
  0x97   :  { %653 = vmatmul.mubr.msk.f32.gmra.mxu0 %vm80_vm0, %v67_v25 }
  0x98   :  { %v849_v52 = vpop.trf.xlu1 }
  0x9a   :  { %v68_v26 = vpop.trf.xlu0 }
  0x9b   :  { %655 = vmatprep.mubr.msk.f32.mxu0 %vm80_vm0, %v68_v26 }
  0x9c   :  { %v310_v55 = vpop.trf.xlu1 }
  0x9e   :  { %v69_v27 = vpop.trf.xlu0 }
  0x9f   :  { %656 = vmatmul.mubr.msk.f32.gmra.mxu0 %vm80_vm0, %v69_v27 }
  0xa0   :  { %v311_v58 = vpop.trf.xlu1 }
  0xa2   :  { %v70_v28 = vpop.trf.xlu0 }
  0xa3   :  { %658 = vmatprep.mubr.msk.f32.mxu0 %vm80_vm0, %v70_v28 }
  0xa4   :  { %v312_v63 = vpop.trf.xlu1 }
  0xa6   :  { %v71_v29 = vpop.trf.xlu0 }
  0xa7   :  { %659 = vmatmul.mubr.msk.f32.gmra.mxu0 %vm80_vm0, %v71_v29 }
  0xa8   :  { %v313_v3 = vpop.trf.xlu1 }
  0xaa   :  { %v72_v30 = vpop.trf.xlu0 }
  0xab   :  { %661 = vmatprep.mubr.msk.f32.mxu0 %vm80_vm0, %v72_v30 }
  0xac   :  { %v314_v7 = vpop.trf.xlu1 }
  0xae   :  { %v73_v31 = vpop.trf.xlu0 }
  0xaf   :  { %662 = vmatmul.mubr.msk.f32.gmra.mxu0 %vm80_vm0, %v73_v31 }
  0xb0   :  { %v315_v11 = vpop.trf.xlu1 }
  0xb2   :  { %v74_v32 = vpop.trf.xlu0 }
  0xb3   :  { %664 = vmatprep.mubr.msk.f32.mxu0 %vm80_vm0, %v74_v32 }
  0xb4   :  { %v316_v15 = vpop.trf.xlu1 }
  0xb6   :  { %v75_v33 = vpop.trf.xlu0 }
  0xb7   :  { %665 = vmatmul.mubr.msk.f32.gmra.mxu0 %vm80_vm0, %v75_v33 }
  0xb8   :  { %v317_v17 = vpop.trf.xlu1 }
  0xba   :  { %v76_v34 = vpop.trf.xlu0 }
  0xbb   :  { %667 = vmatprep.mubr.msk.f32.mxu0 %vm80_vm0, %v76_v34 }
  0xbc   :  { %v318_v18 = vpop.trf.xlu1 }
  0xbe   :  { %v77_v35 = vpop.trf.xlu0 }
  0xbf   :  { %668 = vmatmul.mubr.msk.f32.gmra.mxu0 %vm80_vm0, %v77_v35 }
  0xc0   :  { %v319_v19 = vpop.trf.xlu1 }
  0xc2   :  { %v78_v36 = vpop.trf.xlu0 }
  0xc3   :  { %670 = vmatprep.mubr.msk.f32.mxu0 %vm80_vm0, %v78_v36 }
  0xc4   :  { %v320_v20 = vpop.trf.xlu1 }
  0xc6   :  { %v79_v37 = vpop.trf.xlu0 }
  0xc7   :  { %671 = vmatmul.mubr.msk.f32.gmra.mxu0 %vm80_vm0, %v79_v37 }
  0xc8   :  { %v321_v21 = vpop.trf.xlu1  ;;  %761 = vmatprep.mubr.msk.f32.mxu0 %vm795_vm1, %v794_v22 }
 0x14f   :  { %v839_v39 = vpop.f32.mrf.mxu0 }
 0x150   :  { %v275_v14 = vmax.f32 %v839_v39, 0.0 }
 0x151   :  { %v841_v40 = vpop.f32.mrf.mxu0 }
 0x152   :  { %v274_v16 = vmax.f32 %v841_v40, 0.0 }
 0x157   :  { %v654_v41 = vpop.f32.mrf.mxu0 }
 0x158   :  { %v277_v12 = vmax.f32 %v654_v41, 0.0 }
 0x159   :  { %v843_v42 = vpop.f32.mrf.mxu0 }
 0x15a   :  { %v276_v13 = vmax.f32 %v843_v42, 0.0 }
 0x15f   :  { %v657_v43 = vpop.f32.mrf.mxu0 }
 0x160   :  { %v279_v9 = vmax.f32 %v657_v43, 0.0 }
 0x161   :  { %v215_v44 = vpop.f32.mrf.mxu0 }
 0x162   :  { %v278_v10 = vmax.f32 %v215_v44, 0.0 }
 0x167   :  { %v660_v45 = vpop.f32.mrf.mxu0 }
 0x168   :  { %v281_v6 = vmax.f32 %v660_v45, 0.0 }
 0x169   :  { %v225_v47 = vpop.f32.mrf.mxu0 }
 0x16a   :  { %v280_v8 = vmax.f32 %v225_v47, 0.0 }
 0x16f   :  { %v663_v48 = vpop.f32.mrf.mxu0 }
 0x170   :  { %v283_v4 = vmax.f32 %v663_v48, 0.0 }
 0x171   :  { %v235_v50 = vpop.f32.mrf.mxu0 }
 0x172   :  { %v282_v5 = vmax.f32 %v235_v50, 0.0 }
 0x177   :  { %v666_v51 = vpop.f32.mrf.mxu0 }
 0x178   :  { %v285_v1 = vmax.f32 %v666_v51, 0.0 }
 0x179   :  { %v245_v53 = vpop.f32.mrf.mxu0 }
 0x17a   :  { %v284_v2 = vmax.f32 %v245_v53, 0.0 }
 0x17f   :  { %v669_v54 = vpop.f32.mrf.mxu0 }
 0x180   :  { %v287_v62 = vmax.f32 %v669_v54, 0.0 }
 0x181   :  { %v255_v56 = vpop.f32.mrf.mxu0 }
 0x182   :  { %v286_v0 = vmax.f32 %v255_v56, 0.0 }
 0x187   :  { %v672_v57 = vpop.f32.mrf.mxu0 }
 0x188   :  { %v289_v59 = vmax.f32 %v672_v57, 0.0 }
 0x189   :  { %v265_v60 = vpop.f32.mrf.mxu0 }
 0x18a   :  { %v288_v61 = vmax.f32 %v265_v60, 0.0  ;;  %673 = vmatprep.subr.mxu1 %v289_v59 }
 0x18b   :  { %674 = vmatpush3.msra.mxu1 %v289_v59 }
 0x18c   :  { %675 = vmatprep.subr.mxu1 %v288_v61 }
 0x18d   :  { %676 = vmatpush3.msra.mxu1 %v288_v61 }
 0x18e   :  { %677 = vmatprep.subr.mxu1 %v287_v62 }
 0x18f   :  { %678 = vmatpush3.msra.mxu1 %v287_v62 }
 0x190   :  { %679 = vmatprep.subr.mxu1 %v286_v0 }
 0x191   :  { %680 = vmatpush3.msra.mxu1 %v286_v0 }
 0x192   :  { %681 = vmatprep.subr.mxu1 %v285_v1 }
 0x193   :  { %682 = vmatpush3.msra.mxu1 %v285_v1 }
 0x194   :  { %683 = vmatprep.subr.mxu1 %v284_v2 }
 0x195   :  { %684 = vmatpush3.msra.mxu1 %v284_v2 }
 0x196   :  { %685 = vmatprep.subr.mxu1 %v283_v4 }
 0x197   :  { %686 = vmatpush3.msra.mxu1 %v283_v4 }
 0x198   :  { %687 = vmatprep.subr.mxu1 %v282_v5 }
 0x199   :  { %688 = vmatpush3.msra.mxu1 %v282_v5 }
 0x19a   :  { %689 = vmatprep.subr.mxu1 %v281_v6 }
 0x19b   :  { %690 = vmatpush3.msra.mxu1 %v281_v6 }
 0x19c   :  { %691 = vmatprep.subr.mxu1 %v280_v8 }
 0x19d   :  { %692 = vmatpush3.msra.mxu1 %v280_v8 }
 0x19e   :  { %693 = vmatprep.subr.mxu1 %v279_v9 }
 0x19f   :  { %694 = vmatpush3.msra.mxu1 %v279_v9 }
 0x1a0   :  { %695 = vmatprep.subr.mxu1 %v278_v10 }
 0x1a1   :  { %696 = vmatpush3.msra.mxu1 %v278_v10 }
 0x1a2   :  { %697 = vmatprep.subr.mxu1 %v277_v12 }
 0x1a3   :  { %698 = vmatpush3.msra.mxu1 %v277_v12 }
 0x1a4   :  { %699 = vmatprep.subr.mxu1 %v276_v13 }
 0x1a5   :  { %700 = vmatpush3.msra.mxu1 %v276_v13 }
 0x1a6   :  { %701 = vmatprep.subr.mxu1 %v275_v14 }
 0x1a7   :  { %702 = vmatpush3.msra.mxu1 %v275_v14 }
 0x1a8   :  { %703 = vmatprep.subr.mxu1 %v274_v16 }
 0x1a9   :  { %704 = vmatpush3.msra.mxu1 %v274_v16 }
 0x1aa   :  { %706 = vmatmul.mubr.f32.vlgmr.msra.gmra.mxu1 %v845_v46 }
 0x1ab   :  { %708 = vmatprep.mubr.f32.mxu1 %v847_v49 }
 0x1ae   :  { %709 = vmatmul.mubr.f32.gmra.mxu1 %v849_v52 }
 0x1af   :  { %711 = vmatprep.mubr.f32.mxu1 %v310_v55  ;;  %v47_v55 = vld [vmem:[#allocation2 + $0x98] sm:$0x1] }
 0x1b2   :  { %712 = vmatmul.mubr.f32.gmra.mxu1 %v311_v58 }
 0x1b3   :  { %714 = vmatprep.mubr.f32.mxu1 %v312_v63 }
 0x1b6   :  { %715 = vmatmul.mubr.f32.gmra.mxu1 %v313_v3 }
 0x1b7   :  { %717 = vmatprep.mubr.f32.mxu1 %v314_v7 }
 0x1ba   :  { %718 = vmatmul.mubr.f32.gmra.mxu1 %v315_v11 }
 0x1bb   :  { %720 = vmatprep.mubr.f32.mxu1 %v316_v15 }
 0x1be   :  { %721 = vmatmul.mubr.f32.gmra.mxu1 %v317_v17 }
 0x1bf   :  { %723 = vmatprep.mubr.f32.mxu1 %v318_v18 }
 0x1c2   :  { %724 = vmatmul.mubr.f32.gmra.mxu1 %v319_v19 }
 0x1c3   :  { %726 = vmatprep.mubr.f32.mxu1 %v320_v20 }
 0x1c6   :  { %727 = vmatmul.mubr.f32.gmra.mxu1 %v321_v21 }
 0x26a   :  { %v707_v23 = vpop.f32.mrf.mxu1 }
 0x26b   :  { %v468_v53 = vmax.f32 %v707_v23, 0.0 }
 0x26c   :  { %v388_v24 = vpop.f32.mrf.mxu1 }
 0x26d   :  { %v467_v54 = vmax.f32 %v388_v24, 0.0 }
 0x26e   :  { %v710_v25 = vpop.f32.mrf.mxu1 }
 0x26f   :  { %v470_v51 = vmax.f32 %v710_v25, 0.0 }
 0x270   :  { %v398_v26 = vpop.f32.mrf.mxu1 }
 0x271   :  { %v469_v52 = vmax.f32 %v398_v26, 0.0 }
 0x272   :  { %v713_v27 = vpop.f32.mrf.mxu1 }
 0x273   :  { %v472_v49 = vmax.f32 %v713_v27, 0.0 }
 0x274   :  { %v408_v28 = vpop.f32.mrf.mxu1 }
 0x275   :  { %v471_v50 = vmax.f32 %v408_v28, 0.0 }
 0x276   :  { %v716_v29 = vpop.f32.mrf.mxu1 }
 0x277   :  { %v474_v47 = vmax.f32 %v716_v29, 0.0 }
 0x278   :  { %v418_v30 = vpop.f32.mrf.mxu1 }
 0x279   :  { %v473_v48 = vmax.f32 %v418_v30, 0.0 }
 0x27a   :  { %v719_v31 = vpop.f32.mrf.mxu1 }
 0x27b   :  { %v476_v45 = vmax.f32 %v719_v31, 0.0 }
 0x27c   :  { %v428_v32 = vpop.f32.mrf.mxu1 }
 0x27d   :  { %v475_v46 = vmax.f32 %v428_v32, 0.0 }
 0x27e   :  { %v722_v33 = vpop.f32.mrf.mxu1 }
 0x27f   :  { %v478_v43 = vmax.f32 %v722_v33, 0.0 }
 0x280   :  { %v438_v34 = vpop.f32.mrf.mxu1 }
 0x281   :  { %v477_v44 = vmax.f32 %v438_v34, 0.0 }
 0x282   :  { %v725_v35 = vpop.f32.mrf.mxu1 }
 0x283   :  { %v480_v41 = vmax.f32 %v725_v35, 0.0 }
 0x284   :  { %v448_v36 = vpop.f32.mrf.mxu1 }
 0x285   :  { %v479_v42 = vmax.f32 %v448_v36, 0.0 }
 0x286   :  { %v728_v37 = vpop.f32.mrf.mxu1 }
 0x287   :  { %v482_v38 = vmax.f32 %v728_v37, 0.0 }
 0x288   :  { %v458_v39 = vpop.f32.mrf.mxu1 }
 0x289   :  { %v481_v40 = vmax.f32 %v458_v39, 0.0  ;;  %730 = vmatpush3.msra.mxu0 %v482_v38 }
 0x28a   :  { %731 = vmatprep.subr.mxu0 %v794_v22 }
 0x28b   :  { %732 = vmatpush3.msra.mxu0 %v481_v40 }
 0x28c   :  { %733 = vmatprep.subr.mxu0 %v794_v22 }
 0x28d   :  { %734 = vmatpush3.msra.mxu0 %v480_v41 }
 0x28e   :  { %735 = vmatprep.subr.mxu0 %v794_v22 }
 0x28f   :  { %736 = vmatpush3.msra.mxu0 %v479_v42 }
 0x290   :  { %737 = vmatprep.subr.mxu0 %v794_v22 }
 0x291   :  { %738 = vmatpush3.msra.mxu0 %v478_v43 }
 0x292   :  { %739 = vmatprep.subr.mxu0 %v794_v22 }
 0x293   :  { %740 = vmatpush3.msra.mxu0 %v477_v44 }
 0x294   :  { %741 = vmatprep.subr.mxu0 %v794_v22 }
 0x295   :  { %742 = vmatpush3.msra.mxu0 %v476_v45 }
 0x296   :  { %743 = vmatprep.subr.mxu0 %v794_v22 }
 0x297   :  { %744 = vmatpush3.msra.mxu0 %v475_v46 }
 0x298   :  { %745 = vmatprep.subr.mxu0 %v794_v22 }
 0x299   :  { %746 = vmatpush3.msra.mxu0 %v474_v47 }
 0x29a   :  { %747 = vmatprep.subr.mxu0 %v794_v22 }
 0x29b   :  { %748 = vmatpush3.msra.mxu0 %v473_v48 }
 0x29c   :  { %749 = vmatprep.subr.mxu0 %v794_v22 }
 0x29d   :  { %750 = vmatpush3.msra.mxu0 %v472_v49 }
 0x29e   :  { %751 = vmatprep.subr.mxu0 %v794_v22 }
 0x29f   :  { %752 = vmatpush3.msra.mxu0 %v471_v50 }
 0x2a0   :  { %753 = vmatprep.subr.mxu0 %v794_v22 }
 0x2a1   :  { %754 = vmatpush3.msra.mxu0 %v470_v51 }
 0x2a2   :  { %755 = vmatprep.subr.mxu0 %v794_v22 }
 0x2a3   :  { %756 = vmatpush3.msra.mxu0 %v469_v52 }
 0x2a4   :  { %757 = vmatprep.subr.mxu0 %v794_v22 }
 0x2a5   :  { %758 = vmatpush3.msra.mxu0 %v468_v53 }
 0x2a6   :  { %759 = vmatprep.subr.mxu0 %v794_v22 }
 0x2a7   :  { %760 = vmatpush3.msra.mxu0 %v467_v54 }
 0x2a8   :  { %762 = vmatmul.mubr.f32.vlgmr.msra.gmra.mxu0 %v47_v55 }
 0x368   :  { %v549_v56 = vpop.f32.mrf.mxu0 }
 0x369   :  { %553 = vst [vmem:[%s879_s2] sm:$0x1] %v549_v56 }
 0x36a   :  { %v763_v57 = vpop.f32.mrf.mxu0 }
 0x36b   :  { %558 = vsyncpa [#allocation3], 1 }

</bundles_post_ra>
